<compile_context>
chip_gen: v7x
topology: tpu7x:2x2x1
jax: 0.10.0
libtpu: 0.0.40
codegen_flags: <defaults>
</compile_context>

<pallas_src>
import functools

import jax
import jax.numpy as jnp
from jax.experimental import pallas as pl
from jax.experimental.pallas import tpu as pltpu


# --------------------------------------------------------------------------- #
# Exact GELU (erf-based, no erf primitive needed inside the kernel)
# --------------------------------------------------------------------------- #

_SQRT_HALF = 0.7071067811865476


def _erf_approx(z):
    """Abramowitz & Stegun 7.1.26 rational approximation, |error| <= 1.5e-7."""
    a1, a2, a3, a4, a5 = (0.254829592, -0.284496736, 1.421413741,
                          -1.453152027, 1.061405429)
    p = 0.3275911
    sign = jnp.where(z >= 0.0, 1.0, -1.0)
    az = jnp.abs(z)
    t = 1.0 / (1.0 + p * az)
    poly = ((((a5 * t + a4) * t + a3) * t + a2) * t + a1) * t
    return sign * (1.0 - poly * jnp.exp(-az * az))


def _gelu_exact(x):
    """Exact GELU (matches torch.nn.GELU() default) to ~1e-7 absolute."""
    return 0.5 * x * (1.0 + _erf_approx(x * _SQRT_HALF))


# --------------------------------------------------------------------------- #
# Kernels
# --------------------------------------------------------------------------- #

def _mlp_kernel_resident(x_ref, w1_ref, b1_ref, w2_ref, b2_ref, o_ref):
    """One row tile; full W1/W2 resident in VMEM (constant weight index_maps).

    x_ref:  (tm, C)   activation row tile
    w1_ref: (C, H)    full c_fc weight     (DMA'd from HBM once)
    b1_ref: (1, H)    c_fc bias
    w2_ref: (H, C)    full c_proj weight   (DMA'd from HBM once)
    b2_ref: (1, C)    c_proj bias
    o_ref:  (tm, C)   output row tile
    """
    h = jnp.dot(x_ref[...], w1_ref[...], preferred_element_type=jnp.float32)
    h = _gelu_exact(h + b1_ref[...].astype(jnp.float32))
    out = jnp.dot(h.astype(w2_ref.dtype), w2_ref[...],
                  preferred_element_type=jnp.float32)
    o_ref[...] = (out + b2_ref[...].astype(jnp.float32)).astype(o_ref.dtype)


def _mlp_kernel_stream(x_ref, w1_ref, b1_ref, w2_ref, b2_ref, o_ref, acc_ref):
    """(row-tile, hidden-tile) step for large n_embd (weights streamed in slabs).

    x_ref:  (tm, C)   row tile (resident across the hidden axis)
    w1_ref: (C, th)   c_fc weight slab
    b1_ref: (1, th)   c_fc bias slab
    w2_ref: (th, C)   c_proj weight slab
    b2_ref: (1, C)    c_proj bias (full)
    o_ref:  (tm, C)   output tile (written on last hidden step)
    acc_ref:(tm, C)   f32 accumulator scratch
    """
    j = pl.program_id(1)

    @pl.when(j == 0)
    def _():
        acc_ref[...] = jnp.zeros_like(acc_ref)

    h = jnp.dot(x_ref[...], w1_ref[...], preferred_element_type=jnp.float32)
    h = _gelu_exact(h + b1_ref[...].astype(jnp.float32))
    acc_ref[...] += jnp.dot(h.astype(w2_ref.dtype), w2_ref[...],
                            preferred_element_type=jnp.float32)

    @pl.when(j == pl.num_programs(1) - 1)
    def _():
        o_ref[...] = (acc_ref[...]
                      + b2_ref[...].astype(jnp.float32)).astype(o_ref.dtype)


# --------------------------------------------------------------------------- #
# Tiling helpers
# --------------------------------------------------------------------------- #

def _sublane_rows(dtype):
    """Sublane packing for a dtype: 8 (f32), 16 (bf16), 32 (int8 / fp8)."""
    return max(8, 32 // jnp.dtype(dtype).itemsize)


def _round_down(value, multiple):
    return max(multiple, (value // multiple) * multiple)


def _vmem_capacity_bytes():
    """Physical VMEM of the attached TPU; assume the smallest part on failure."""
    try:
        return int(pltpu.get_tpu_info().vmem_capacity_bytes)
    except Exception:  # pragma: no cover - emulator / older runtimes
        return 64 << 20


def _pick_hidden_tile(H, desired):
    """Largest divisor of H <= desired that is 256-aligned (MXU-friendly);
    fall back to 128 alignment, then to H itself."""
    desired = min(desired, H)
    for align in (256, 128):
        th = _round_down(desired, align)
        while th >= align:
            if H % th == 0:
                return th
            th -= align
    return H


# --------------------------------------------------------------------------- #
# Wrapper
# --------------------------------------------------------------------------- #

@functools.partial(jax.jit,
                   static_argnames=("block_rows", "block_hidden", "force_stream"))
def mlp_pallas(x, w1, b1, w2, b2, *, block_rows=1024, block_hidden=512,
               force_stream=False):
    """x: (B, T, C); w1: (C, 4C); b1: (4C,); w2: (4C, C); b2: (C,)."""
    B, T, C = x.shape
    H = w1.shape[1]
    M = B * T
    x2d = x.reshape(M, C)
    b1_2d = b1.reshape(1, H)
    b2_2d = b2.reshape(1, C)

    x_item = x.dtype.itemsize
    w_item = w1.dtype.itemsize
    sub = _sublane_rows(x.dtype)

    # Row tile: big enough that the weight stream's arithmetic intensity
    # (~2*tm/itemsize flop/byte) sits above the HBM ridge; 256-aligned for the
    # v6e/v7x MXU when possible, otherwise aligned to the sublane packing.
    tm = min(block_rows, M)
    if tm < M:
        tm = _round_down(tm, 256) if tm >= 256 else _round_down(tm, sub)
    n_row_tiles = pl.cdiv(M, tm)

    # Generation-aware VMEM budget: ~75% of physical (48 MiB on v7x's 64 MiB,
    # ~96 MiB on v5e/v6e's 128 MiB) to leave compiler-scratch headroom.
    vmem_cap = _vmem_capacity_bytes()
    vmem_budget = int(0.75 * vmem_cap)

    def _resident_estimate():
        return (2 * (C * H + H * C + H + C) * w_item   # weights+biases (dbl-buffered)
                + 4 * tm * C * x_item                  # x + out tiles (dbl-buffered)
                + 2 * tm * H * 4)                      # hidden intermediate (+cast)

    def _stream_estimate(tm_, th_):
        return (2 * (C * th_ + th_ * C + th_) * w_item  # dbl-buffered W1/W2/b1 slabs
                + 2 * C * w_item                        # b2
                + 4 * tm_ * C * x_item                  # x + out tiles
                + tm_ * C * 4                           # f32 accumulator
                + 2 * tm_ * th_ * 4)                    # hidden intermediate (+cast)

    use_resident = (not force_stream) and (_resident_estimate() <= vmem_budget)

    flops = 4 * M * C * H            # two matmuls
    transcend = 2 * M * H            # exp + reciprocal of the in-kernel GELU

    if use_resident:
        vmem_est = _resident_estimate()
        # Weights are read from HBM exactly once (constant index_maps).
        bytes_accessed = (2 * M * C * x_item
                          + (C * H + H * C + H + C) * w_item)
    else:
        th = _pick_hidden_tile(H, block_hidden)
        # Shrink the hidden slab until the streaming working set fits the budget.
        while _stream_estimate(tm, th) > vmem_budget and th > 256:
            new_th = _pick_hidden_tile(H, th - 128)
            if new_th >= th:
                break
            th = new_th
        vmem_est = _stream_estimate(tm, th)
        # W1/W2/b1 are re-streamed once per row tile (index_maps depend on j only).
        bytes_accessed = (2 * M * C * x_item
                          + n_row_tiles * (C * H + H * C + H) * w_item
                          + C * w_item)

    vmem_limit = int(min(max(int(1.5 * vmem_est), 32 << 20), vmem_budget))
    vmem_limit = max(vmem_limit, min(int(1.25 * vmem_est), vmem_cap))

    cost = pl.CostEstimate(flops=flops, transcendentals=transcend,
                           bytes_accessed=int(bytes_accessed))

    if use_resident:
        out2d = pl.pallas_call(
            _mlp_kernel_resident,
            out_shape=jax.ShapeDtypeStruct((M, C), x.dtype),
            grid_spec=pltpu.PrefetchScalarGridSpec(
                num_scalar_prefetch=0,
                grid=(n_row_tiles,),
                in_specs=[
                    pl.BlockSpec((tm, C), lambda i: (i, 0)),   # x row tile
                    pl.BlockSpec((C, H), lambda i: (0, 0)),    # W1 (resident)
                    pl.BlockSpec((1, H), lambda i: (0, 0)),    # b1 (resident)
                    pl.BlockSpec((H, C), lambda i: (0, 0)),    # W2 (resident)
                    pl.BlockSpec((1, C), lambda i: (0, 0)),    # b2 (resident)
                ],
                out_specs=pl.BlockSpec((tm, C), lambda i: (i, 0)),
            ),
            compiler_params=pltpu.CompilerParams(
                dimension_semantics=("parallel",),
                vmem_limit_bytes=vmem_limit,
            ),
            cost_estimate=cost,
        )(x2d, w1, b1_2d, w2, b2_2d)
    else:
        grid = (n_row_tiles, H // th)
        out2d = pl.pallas_call(
            _mlp_kernel_stream,
            out_shape=jax.ShapeDtypeStruct((M, C), x.dtype),
            grid_spec=pltpu.PrefetchScalarGridSpec(
                num_scalar_prefetch=0,
                grid=grid,
                in_specs=[
                    pl.BlockSpec((tm, C), lambda i, j: (i, 0)),   # x tile (j-invariant)
                    pl.BlockSpec((C, th), lambda i, j: (0, j)),   # W1 slab
                    pl.BlockSpec((1, th), lambda i, j: (0, j)),   # b1 slab
                    pl.BlockSpec((th, C), lambda i, j: (j, 0)),   # W2 slab
                    pl.BlockSpec((1, C), lambda i, j: (0, 0)),    # b2
                ],
                out_specs=pl.BlockSpec((tm, C), lambda i, j: (i, 0)),
                scratch_shapes=[pltpu.VMEM((tm, C), jnp.float32)],
            ),
            compiler_params=pltpu.CompilerParams(
                dimension_semantics=("parallel", "arbitrary"),
                vmem_limit_bytes=vmem_limit,
            ),
            cost_estimate=cost,
        )(x2d, w1, b1_2d, w2, b2_2d)

    return out2d.reshape(B, T, C)


# --------------------------------------------------------------------------- #
# Reference + test harness
# --------------------------------------------------------------------------- #

def _init_params(key, n_embd, dtype=jnp.float32):
    """nn.Linear-style init; weights stored (in_features, out_features)."""
    k1, k2, k3, k4 = jax.random.split(key, 4)
    hidden = 4 * n_embd
    lim1 = 1.0 / jnp.sqrt(n_embd)
    lim2 = 1.0 / jnp.sqrt(hidden)
    w1 = jax.random.uniform(k1, (n_embd, hidden), dtype, -lim1, lim1)
    b1 = jax.random.uniform(k2, (hidden,), dtype, -lim1, lim1)
    w2 = jax.random.uniform(k3, (hidden, n_embd), dtype, -lim2, lim2)
    b2 = jax.random.uniform(k4, (n_embd,), dtype, -lim2, lim2)
    return w1, b1, w2, b2


def _mlp_ref(x, w1, b1, w2, b2):
    hp = jax.lax.Precision.HIGHEST
    h = jax.nn.gelu(jnp.dot(x, w1, precision=hp) + b1, approximate=False)
    return jnp.dot(h, w2, precision=hp) + b2


if __name__ == "__main__":
    # config: n_embd=32, bias=True, dropout=0.0
    B, T, C = 2, 8, 32
    key = jax.random.PRNGKey(0)
    kx, kp, kx2, kp2 = jax.random.split(key, 4)

    # Tolerance accommodates MXU f32 (multi-pass bf16) numerics vs the
    # HIGHEST-precision XLA reference.
    ATOL = RTOL = 5e-3

    # --- Path 1: resident-weights kernel (weights fit VMEM) ----------------- #
    x = jax.random.normal(kx, (B, T, C), jnp.float32)
    w1, b1, w2, b2 = _init_params(kp, C)
    out = jax.block_until_ready(mlp_pallas(x, w1, b1, w2, b2))
    ref = _mlp_ref(x, w1, b1, w2, b2)
    assert out.shape == (B, T, C)
    assert jnp.allclose(out, ref, atol=ATOL, rtol=RTOL), "resident path mismatch"

    # --- Path 2: streaming (hidden-tiled) kernel, forced for coverage ------- #
    B2, T2, C2 = 2, 64, 128
    x2 = jax.random.normal(kx2, (B2, T2, C2), jnp.float32)
    p2 = _init_params(kp2, C2)
    out2 = jax.block_until_ready(
        mlp_pallas(x2, *p2, block_hidden=256, force_stream=True))
    ref2 = _mlp_ref(x2, *p2)
    assert out2.shape == (B2, T2, C2)
    assert jnp.allclose(out2, ref2, atol=ATOL, rtol=RTOL), "streaming path mismatch"

    print("KERNEL_OK")
</pallas_src>

<mosaic_0001>
module attributes {stable_mosaic.version = 11 : i64} {
  func.func @_mlp_kernel_resident(%arg0: i32, %arg1: memref<16x32xf32, #tpu.memory_space<vmem>>, %arg2: memref<32x128xf32, #tpu.memory_space<vmem>>, %arg3: memref<1x128xf32, #tpu.memory_space<vmem>>, %arg4: memref<128x32xf32, #tpu.memory_space<vmem>>, %arg5: memref<1x32xf32, #tpu.memory_space<vmem>>, %arg6: memref<16x32xf32, #tpu.memory_space<vmem>>) attributes {dimension_semantics = [#tpu.dimension_semantics<parallel>], iteration_bounds = array<i64: 1>, scalar_prefetch = 0 : i64, scratch_operands = 0 : i64, tpu.core_type = #tpu.core_type<tc>, window_params = [{transform_indices = @transform_0, window_bounds = array<i64: 16, 32>}, {pipeline_mode = #tpu.pipeline_mode<synchronous>, transform_indices = @transform_1, window_bounds = array<i64: 32, 128>}, {pipeline_mode = #tpu.pipeline_mode<synchronous>, transform_indices = @transform_2, window_bounds = array<i64: 1, 128>}, {pipeline_mode = #tpu.pipeline_mode<synchronous>, transform_indices = @transform_3, window_bounds = array<i64: 128, 32>}, {pipeline_mode = #tpu.pipeline_mode<synchronous>, transform_indices = @transform_4, window_bounds = array<i64: 1, 32>}, {transform_indices = @transform_5, window_bounds = array<i64: 16, 32>}]} {
    %c0 = arith.constant 0 : index
    %c0_0 = arith.constant 0 : index
    %0 = vector.load %arg1[%c0, %c0_0] : memref<16x32xf32, #tpu.memory_space<vmem>>, vector<16x32xf32>
    %c0_1 = arith.constant 0 : index
    %c0_2 = arith.constant 0 : index
    %1 = vector.load %arg2[%c0_1, %c0_2] : memref<32x128xf32, #tpu.memory_space<vmem>>, vector<32x128xf32>
    %cst = arith.constant dense<0.000000e+00> : vector<16x128xf32>
    %2 = tpu.matmul %0, %1, %cst {dimension_numbers = #tpu.dot_dimension_numbers<[1], [0], [0], [1], [0, 0, 1, 1], [], []>} : vector<16x32xf32>, vector<32x128xf32>, vector<16x128xf32> -> vector<16x128xf32>
    %c0_3 = arith.constant 0 : index
    %c0_4 = arith.constant 0 : index
    %3 = vector.load %arg3[%c0_3, %c0_4] : memref<1x128xf32, #tpu.memory_space<vmem>>, vector<1x128xf32>
    %4 = vector.broadcast %3 : vector<1x128xf32> to vector<16x128xf32>
    %5 = arith.addf %2, %4 : vector<16x128xf32>
    %cst_5 = arith.constant 5.000000e-01 : f32
    %6 = vector.broadcast %cst_5 : f32 to vector<16x128xf32>
    %7 = arith.mulf %6, %5 : vector<16x128xf32>
    %cst_6 = arith.constant 0.707106769 : f32
    %8 = vector.broadcast %cst_6 : f32 to vector<16x128xf32>
    %9 = arith.mulf %5, %8 : vector<16x128xf32>
    %cst_7 = arith.constant 0.000000e+00 : f32
    %10 = vector.broadcast %cst_7 : f32 to vector<16x128xf32>
    %11 = arith.cmpf oge, %9, %10 : vector<16x128xf32>
    %cst_8 = arith.constant 1.000000e+00 : f32
    %cst_9 = arith.constant -1.000000e+00 : f32
    %12 = vector.broadcast %cst_8 : f32 to vector<16x128xf32>
    %13 = vector.broadcast %cst_9 : f32 to vector<16x128xf32>
    %14 = arith.select %11, %12, %13 : vector<16x128xi1>, vector<16x128xf32>
    %15 = math.absf %9 : vector<16x128xf32>
    %cst_10 = arith.constant 0.327591091 : f32
    %16 = vector.broadcast %cst_10 : f32 to vector<16x128xf32>
    %17 = arith.mulf %16, %15 : vector<16x128xf32>
    %cst_11 = arith.constant 1.000000e+00 : f32
    %18 = vector.broadcast %cst_11 : f32 to vector<16x128xf32>
    %19 = arith.addf %18, %17 : vector<16x128xf32>
    %cst_12 = arith.constant 1.000000e+00 : f32
    %20 = vector.broadcast %cst_12 : f32 to vector<16x128xf32>
    %21 = arith.divf %20, %19 : vector<16x128xf32>
    %cst_13 = arith.constant 1.06140542 : f32
    %22 = vector.broadcast %cst_13 : f32 to vector<16x128xf32>
    %23 = arith.mulf %22, %21 : vector<16x128xf32>
    %cst_14 = arith.constant -1.45315206 : f32
    %24 = vector.broadcast %cst_14 : f32 to vector<16x128xf32>
    %25 = arith.addf %23, %24 : vector<16x128xf32>
    %26 = arith.mulf %25, %21 : vector<16x128xf32>
    %cst_15 = arith.constant 1.42141378 : f32
    %27 = vector.broadcast %cst_15 : f32 to vector<16x128xf32>
    %28 = arith.addf %26, %27 : vector<16x128xf32>
    %29 = arith.mulf %28, %21 : vector<16x128xf32>
    %cst_16 = arith.constant -0.284496725 : f32
    %30 = vector.broadcast %cst_16 : f32 to vector<16x128xf32>
    %31 = arith.addf %29, %30 : vector<16x128xf32>
    %32 = arith.mulf %31, %21 : vector<16x128xf32>
    %cst_17 = arith.constant 0.254829586 : f32
    %33 = vector.broadcast %cst_17 : f32 to vector<16x128xf32>
    %34 = arith.addf %32, %33 : vector<16x128xf32>
    %35 = arith.mulf %34, %21 : vector<16x128xf32>
    %cst_18 = arith.constant 0.000000e+00 : f32
    %36 = vector.broadcast %cst_18 : f32 to vector<16x128xf32>
    %37 = arith.subf %36, %15 : vector<16x128xf32>
    %38 = arith.mulf %37, %15 : vector<16x128xf32>
    %39 = math.exp %38 : vector<16x128xf32>
    %40 = arith.mulf %35, %39 : vector<16x128xf32>
    %cst_19 = arith.constant 1.000000e+00 : f32
    %41 = vector.broadcast %cst_19 : f32 to vector<16x128xf32>
    %42 = arith.subf %41, %40 : vector<16x128xf32>
    %43 = arith.mulf %14, %42 : vector<16x128xf32>
    %cst_20 = arith.constant 1.000000e+00 : f32
    %44 = vector.broadcast %cst_20 : f32 to vector<16x128xf32>
    %45 = arith.addf %44, %43 : vector<16x128xf32>
    %46 = arith.mulf %7, %45 : vector<16x128xf32>
    %c0_21 = arith.constant 0 : index
    %c0_22 = arith.constant 0 : index
    %47 = vector.load %arg4[%c0_21, %c0_22] : memref<128x32xf32, #tpu.memory_space<vmem>>, vector<128x32xf32>
    %cst_23 = arith.constant dense<0.000000e+00> : vector<16x32xf32>
    %48 = tpu.matmul %46, %47, %cst_23 {dimension_numbers = #tpu.dot_dimension_numbers<[1], [0], [0], [1], [0, 0, 1, 1], [], []>} : vector<16x128xf32>, vector<128x32xf32>, vector<16x32xf32> -> vector<16x32xf32>
    %c0_24 = arith.constant 0 : index
    %c0_25 = arith.constant 0 : index
    %49 = vector.load %arg5[%c0_24, %c0_25] : memref<1x32xf32, #tpu.memory_space<vmem>>, vector<1x32xf32>
    %50 = vector.broadcast %49 : vector<1x32xf32> to vector<16x32xf32>
    %51 = arith.addf %48, %50 : vector<16x32xf32>
    %c0_26 = arith.constant 0 : index
    %c0_27 = arith.constant 0 : index
    %52 = vector.load %arg6[%c0_26, %c0_27] : memref<16x32xf32, #tpu.memory_space<vmem>>, vector<16x32xf32>
    tpu.vector_store %arg6[%c0_26, %c0_27], %51 {strides = array<i32>} : memref<16x32xf32, #tpu.memory_space<vmem>>, vector<16x32xf32>,
    return
  }
  func.func @transform_0(%arg0: i32) -> (i32, i32) {
    %c0_i32 = arith.constant 0 : i32
    %c0_i32_0 = arith.constant 0 : i32
    return %arg0, %c0_i32 : i32, i32
  }
  func.func @transform_1(%arg0: i32) -> (i32, i32) {
    %c0_i32 = arith.constant 0 : i32
    %c0_i32_0 = arith.constant 0 : i32
    %c0_i32_1 = arith.constant 0 : i32
    return %c0_i32, %c0_i32_0 : i32, i32
  }
  func.func @transform_2(%arg0: i32) -> (i32, i32) {
    %c0_i32 = arith.constant 0 : i32
    %c0_i32_0 = arith.constant 0 : i32
    %c0_i32_1 = arith.constant 0 : i32
    return %c0_i32, %c0_i32_0 : i32, i32
  }
  func.func @transform_3(%arg0: i32) -> (i32, i32) {
    %c0_i32 = arith.constant 0 : i32
    %c0_i32_0 = arith.constant 0 : i32
    %c0_i32_1 = arith.constant 0 : i32
    return %c0_i32, %c0_i32_0 : i32, i32
  }
  func.func @transform_4(%arg0: i32) -> (i32, i32) {
    %c0_i32 = arith.constant 0 : i32
    %c0_i32_0 = arith.constant 0 : i32
    %c0_i32_1 = arith.constant 0 : i32
    return %c0_i32, %c0_i32_0 : i32, i32
  }
  func.func @transform_5(%arg0: i32) -> (i32, i32) {
    %c0_i32 = arith.constant 0 : i32
    %c0_i32_0 = arith.constant 0 : i32
    return %arg0, %c0_i32 : i32, i32
  }
}

</mosaic_0001>

<bundles_post_ra>
// kernel: mlp_pallas.1
= control target key start
LH: loop header
LB: loop body
LE: loop exit
PB: predicated region body
PF: predicated region fallthrough
CT: control target
= control target key end

     0   :  { %vm34_vm0 = vcmask 261120   ;;  %s558_s0 = inlined_call_operand.vmem [shape: f32[16,32], index: 0, kind: input, shape index: {}]   ;;  %s559_s1 = inlined_call_operand.vmem [shape: f32[32,128], index: 1, kind: input, shape index: {}]   ;;  %s560_s2 = inlined_call_operand.vmem [shape: f32[1,128], index: 2, kind: input, shape index: {}]   ;;  %s561_s3 = inlined_call_operand.vmem [shape: f32[128,32], index: 3, kind: input, shape index: {}]   ;;  %s562_s4 = inlined_call_operand.vmem [shape: f32[1,32], index: 4, kind: input, shape index: {}]   ;;  %s563_s5 = inlined_call_operand.hbm [shape: f32[16,32], index: 5, kind: output, shape index: {}]  }
   0x1   :  { %v23_v0 = vld [vmem:[%s559_s1] sm:$0xff]  ;;  %v24_v1 = vld [vmem:[%s559_s1 + $0x8] sm:$0xff]  ;;  %v25_v2 = vld [vmem:[%s559_s1 + $0x10] sm:$0xff] }
   0x2   :  { %v360_v3 = vpack.c.bf16 %v24_v1, %v23_v0  ;;  %v26_v4 = vld [vmem:[%s559_s1 + $0x18] sm:$0xff]  ;;  %v21_v5 = vld [vmem:[%s558_s0] sm:$0xff] }
   0x3   :  { %v364_v6 = vpack.c.bf16 %v26_v4, %v25_v2  ;;  %322 = vmatprep.mubr.msk.f32.mxu0 %vm34_vm0, %v21_v5 }
   0x4   :  { %10 = vsyncpa [#allocation3], 0  ;;  %361 = vmatprep.subr.bf16.mxu0 %v360_v3  ;;  %v22_v7 = vld [vmem:[%s558_s0 + $0x8] sm:$0xff]  ;;  %v170_v8 = vld [vmem:[%s561_s3] sm:$0xff]  ;;  %s437_s11 = smov [#allocation2]  }
   0x5   :  { %363 = vmatpush3.bf16.msra.mxu0 %v360_v3  ;;  %v171_v9 = vld [vmem:[%s561_s3 + $0x8] sm:$0xff]  ;;  %v172_v10 = vld [vmem:[%s561_s3 + $0x10] sm:$0xff]  ;;  %v173_v12 = vld [vmem:[%s561_s3 + $0x18] sm:$0xff]  ;;  %s275_s0 = sshll.u32 %s437_s11, 4  ;;  %s276_s0 = int_to_ptr.vmem [resolvable:$true] %s275_s0 }
   0x6   :  { %365 = vmatprep.subr.bf16.mxu0 %v364_v6  ;;  %v368_v11 = vpack.c.bf16 %v171_v9, %v170_v8  ;;  %v372_v13 = vpack.c.bf16 %v173_v12, %v172_v10  ;;  %v174_v14 = vld [vmem:[%s561_s3 + $0x20] sm:$0xff]  ;;  %v175_v15 = vld [vmem:[%s561_s3 + $0x28] sm:$0xff]  ;;  %v176_v17 = vld [vmem:[%s561_s3 + $0x30] sm:$0xff]  ;;  %v436_v12 = vmov -1.0   ;;  %s412_s12 = scalar_lea.vmem %s276_s0, 256  ;;  %p417_p1 = scmp.lt.s32.totalorder %s276_s0, %s276_s0 }
   0x7   :  { %v376_v16 = vpack.c.bf16 %v175_v15, %v174_v14  ;;  %v177_v18 = vld [vmem:[%s561_s3 + $0x38] sm:$0xff]  ;;  %v178_v20 = vld [vmem:[%s561_s3 + $0x40] sm:$0xff]  ;;  %v179_v21 = vld [vmem:[%s561_s3 + $0x48] sm:$0xff]  ;;  %p413_p0 = scmp.ne.s32.totalorder %s276_s0, %s412_s12  ;;  %p418_p2 = scmp.lt.s32.totalorder %s412_s12, %s412_s12 }
   0x8   :  { %369 = vmatprep.subr.bf16.mxu1 %v368_v11  ;;  %v380_v19 = vpack.c.bf16 %v177_v18, %v176_v17  ;;  %v384_v22 = vpack.c.bf16 %v179_v21, %v178_v20  ;;  %v180_v23 = vld [vmem:[%s561_s3 + $0x50] sm:$0xff]  ;;  %v181_v24 = vld [vmem:[%s561_s3 + $0x58] sm:$0xff]  ;;  %v182_v26 = vld [vmem:[%s561_s3 + $0x60] sm:$0xff] }
   0x9   :  { %367 = vmatpush3.bf16.msra.mxu0 %v364_v6  ;;  %371 = vmatpush3.bf16.msra.mxu1 %v368_v11  ;;  %v388_v25 = vpack.c.bf16 %v181_v24, %v180_v23  ;;  %v183_v27 = vld [vmem:[%s561_s3 + $0x68] sm:$0xff]  ;;  %v184_v29 = vld [vmem:[%s561_s3 + $0x70] sm:$0xff]  ;;  %v185_v30 = vld [vmem:[%s561_s3 + $0x78] sm:$0xff]  ;;  %p419_p3 = por %p418_p2, %p417_p1 }
   0xa   :  { %373 = vmatprep.subr.bf16.mxu1 %v372_v13  ;;  %v392_v28 = vpack.c.bf16 %v183_v27, %v182_v26  ;;  %v396_v31 = vpack.c.bf16 %v185_v30, %v184_v29  ;;  %v286_v32 = vld [vmem:[%s560_s2] ss:$0 sm:$0xff] }
   0xb   :  { %v289_v24 = vld [vmem:[%s562_s4] ss:$0 sm:$0xff]  ;;  %p420_p4 = pnand %p419_p3, %p413_p0 }
   0xc   :  { %323 = vmatmul.mubr.msk.f32.vlgmr.msra.gmra.mrb[0].mxu0 %vm34_vm0, %v22_v7 }
   0xd   :  { %375 = vmatpush3.bf16.msra.mxu1 %v372_v13 }
   0xe   :  { %377 = vmatprep.subr.bf16.mxu1 %v376_v16 }
  0x11   :  { %379 = vmatpush3.bf16.msra.mxu1 %v376_v16 }
  0x12   :  { %381 = vmatprep.subr.bf16.mxu1 %v380_v19 }
  0x15   :  { %383 = vmatpush3.bf16.msra.mxu1 %v380_v19 }
  0x16   :  { %385 = vmatprep.subr.bf16.mxu1 %v384_v22 }
  0x19   :  { %387 = vmatpush3.bf16.msra.mxu1 %v384_v22 }
  0x1a   :  { %389 = vmatprep.subr.bf16.mxu1 %v388_v25 }
  0x1d   :  { %391 = vmatpush3.bf16.msra.mxu1 %v388_v25 }
  0x1e   :  { %393 = vmatprep.subr.bf16.mxu1 %v392_v28 }
  0x21   :  { %395 = vmatpush3.bf16.msra.mxu1 %v392_v28 }
  0x22   :  { %397 = vmatprep.subr.bf16.mxu1 %v396_v31 }
  0x25   :  { %399 = vmatpush3.bf16.msra.mxu1 %v396_v31 }
  0xdf   :  { %v324_v33 = vpop.f32.mrb[0].mxu0 }
  0xe0   :  { %v113_v34 = vadd.f32 %v324_v33, %v286_v32  ;;  %v107_v35 = vpop.f32.mrb[1].mxu0 }
  0xe1   :  { %v108_v36 = vadd.f32 %v286_v32, %v107_v35 }
  0xe2   :  { %v119_v37 = vmul.f32 0.70710677, %v113_v34  ;;  %v117_v21 = vmul.f32 0.5, %v113_v34 }
  0xe3   :  { %v118_v38 = vmul.f32 0.70710677, %v108_v36  ;;  %v116_v19 = vmul.f32 0.5, %v108_v36 }
  0xe4   :  { %v125_v39 = vand.u32 2147483647, %v119_v37  ;;  %vm121_vm1 = vcmp.ge.f32.partialorder %v119_v37, 0.0 }
  0xe5   :  { %v124_v40 = vand.u32 2147483647, %v118_v38  ;;  %vm120_vm2 = vcmp.ge.f32.partialorder %v118_v38, 0.0  ;;  %v123_v13 = vsel %vm121_vm1, 1.0, %v436_v12 }
  0xe6   :  { %v127_v41 = vmul.f32 0.3275911, %v125_v39  ;;  %v153_v45 = vsub.f32 0.0, %v125_v39  ;;  %v122_v15 = vsel %vm120_vm2, 1.0, %v436_v12 }
  0xe7   :  { %v126_v42 = vmul.f32 0.3275911, %v124_v40  ;;  %v152_v46 = vsub.f32 0.0, %v124_v40 }
  0xe8   :  { %v129_v43 = vadd.f32 1.0, %v127_v41  ;;  %v155_v48 = vmul.f32 %v153_v45, %v125_v39 }
  0xe9   :  { %v128_v44 = vadd.f32 1.0, %v126_v42  ;;  %v154_v50 = vmul.f32 %v152_v46, %v124_v40 }
  0xea   :  { %404 = vrcp.f32 %v129_v43  ;;  %v158_v54 = vmul.f32 1.442695, %v155_v48 }
  0xeb   :  { %406 = vrcp.f32 %v128_v44  ;;  %v156_v56 = vmul.f32 1.442695, %v154_v50 }
  0xec   :  { %408 = vpow2.f32 %v158_v54 }
  0xed   :  { %410 = vpow2.f32 %v156_v56 }
  0xf4   :  { %v405_v47 = vpop.eup %404 }
  0xf5   :  { %v407_v49 = vpop.eup %406  ;;  %v135_v51 = vmul.f32 1.0614054, %v405_v47 }
  0xf6   :  { %v134_v52 = vmul.f32 1.0614054, %v407_v49  ;;  %v409_v6 = vpop.eup %408 }
  0xf7   :  { %v137_v53 = vadd.f32 -1.4531521, %v135_v51  ;;  %v411_v8 = vpop.eup %410 }
  0xf8   :  { %v136_v55 = vadd.f32 -1.4531521, %v134_v52 }
  0xf9   :  { %v139_v57 = vmul.f32 %v405_v47, %v137_v53 }
  0xfa   :  { %v138_v58 = vmul.f32 %v407_v49, %v136_v55 }
  0xfb   :  { %v141_v59 = vadd.f32 1.4214138, %v139_v57 }
  0xfc   :  { %v140_v60 = vadd.f32 1.4214138, %v138_v58 }
  0xfd   :  { %v143_v61 = vmul.f32 %v405_v47, %v141_v59 }
  0xfe   :  { %v142_v62 = vmul.f32 %v407_v49, %v140_v60 }
  0xff   :  { %v145_v63 = vadd.f32 -0.28449672, %v143_v61 }
 0x100   :  { %v144_v0 = vadd.f32 -0.28449672, %v142_v62 }
 0x101   :  { %v147_v1 = vmul.f32 %v405_v47, %v145_v63 }
 0x102   :  { %v146_v2 = vmul.f32 %v407_v49, %v144_v0 }
 0x103   :  { %v149_v3 = vadd.f32 0.2548296, %v147_v1 }
 0x104   :  { %v148_v4 = vadd.f32 0.2548296, %v146_v2 }
 0x105   :  { %v151_v5 = vmul.f32 %v405_v47, %v149_v3 }
 0x106   :  { %v150_v7 = vmul.f32 %v407_v49, %v148_v4 }
 0x107   :  { %v161_v9 = vmul.f32 %v409_v6, %v151_v5 }
 0x108   :  { %v160_v10 = vmul.f32 %v411_v8, %v150_v7 }
 0x109   :  { %v163_v11 = vsub.f32 1.0, %v161_v9 }
 0x10a   :  { %v162_v14 = vsub.f32 1.0, %v160_v10 }
 0x10b   :  { %v165_v16 = vmul.f32 %v163_v11, %v123_v13 }
 0x10c   :  { %v164_v17 = vmul.f32 %v162_v14, %v122_v15 }
 0x10d   :  { %v167_v18 = vadd.f32 1.0, %v165_v16 }
 0x10e   :  { %v166_v20 = vadd.f32 1.0, %v164_v17 }
 0x10f   :  { %v169_v23 = vmul.f32 %v167_v18, %v117_v21 }
 0x110   :  { %v168_v22 = vmul.f32 %v166_v20, %v116_v19 }
 0x112   :  { %357 = vmatprep.mubr.f32.mxu1 %v168_v22 }
 0x113   :  { %358 = vmatmul.mubr.f32.vlgmr.msra.gmra.mrb[0].mxu1 %v169_v23 }
 0x1e6   :  { %v359_v25 = vpop.f32.mrb[0].mxu1 }
 0x1e7   :  { %v265_v26 = vadd.f32 %v359_v25, %v289_v24  ;;  %v259_v27 = vpop.f32.mrb[1].mxu1 }
 0x1e8   :  { %v260_v28 = vadd.f32 %v289_v24, %v259_v27 }
 0x1e9   :  { %269 = vst.msk [vmem:[#allocation2 + $0x8] sm:$0xff] %vm34_vm0, %v265_v26 }
 0x1ea   :  { %268 = vst.msk [vmem:[#allocation2] sm:$0xff] %vm34_vm0, %v260_v28 }
 0x1eb   :  { %423 = shalt.err (!%p420_p4)
}
 0x1ec   :  { %s424_s14 = scalar_lea.hbm %s563_s5, 256 }
 0x1ed   :  { %p425_p5 = scmp.ne.s32.totalorder %s563_s5, %s424_s14  ;;  %p428_p6 = scmp.lt.u32.totalorder %s424_s14, %s563_s5 }
 0x1ef   :  { %p430_p7 = pnand %p428_p6, %p425_p5 }
 0x1f1   :  { %433 = shalt.err (!%p430_p7)
}
 0x1f2   :  { %s438_s19 = smov 128   ;;  %s439_s20 = smov 8  }
 0x1f3   :  { %281 = dma.vmem_to_hbm [thread:$0]  %s276_s0, 256, %s563_s5, [#allocation3], %s438_s19, %s438_s19, %s439_s20  }
 0x1f4   :  { %434 = dma.done.wait [#allocation3], 256  }
 0x1f5   :  { %435 = vsyncadd [#allocation3], 4294967040 }
 0x1f6   :  { %285 = vsyncpa [#allocation3], 1 }

</bundles_post_ra>
